<compile_context>
chip_gen: v7x
topology: tpu7x:2x2x1
jax: 0.10.0
libtpu: 0.0.40
codegen_flags: <defaults>
</compile_context>

<pallas_src>
import functools

import jax
import jax.numpy as jnp
from jax.experimental import pallas as pl
from jax.experimental.pallas import tpu as pltpu


HX = 32   # self.hx_size
H1 = 64   # first feature-layer width


def _round_up(x, m):
    return ((x + m - 1) // m) * m


def _bias_offsets(h1tot, gpad, qpad):
    off_b1 = 0
    off_b2 = _round_up(h1tot, 128)
    off_bih = off_b2 + gpad
    off_bhhn = off_bih + 3 * gpad
    off_bq = off_bhhn + gpad
    bw = off_bq + qpad
    return off_b1, off_b2, off_bih, off_bhhn, off_bq, bw


def _qnet_kernel(obs_ref, hid_ref, w1_ref, w2_ref, wih_ref, whh_ref, wq_ref,
                 bias_ref, out_ref, *, h1tot, gpad, qpad,
                 off_b1, off_b2, off_bih, off_bhhn, off_bq):
    """One grid step = one batch tile, all agents fused.

    Ref shapes:
      obs_ref : (TB, OBS_PAD)           hid_ref : (TB, GPAD)   (pad lanes = 0)
      w1_ref  : (OBS_PAD, H1TOT)        w2_ref  : (H1TOT, GPAD)
      wih_ref : (GPAD, 3*GPAD)          whh_ref : (GPAD, 3*GPAD)
      wq_ref  : (GPAD, QPAD)            bias_ref: (1, BW)  packed bias slab
      out_ref : (TB, GPAD + QPAD)       = [ h_new | q ], both 128-aligned
    """
    f32 = jnp.float32

    def mm(a, w):
        return jnp.dot(a, w, preferred_element_type=f32)

    obs = obs_ref[...]
    h = hid_ref[...]

    b1 = bias_ref[:, off_b1:off_b1 + h1tot]
    b2 = bias_ref[:, off_b2:off_b2 + gpad]
    bih = bias_ref[:, off_bih:off_bih + 3 * gpad]
    bhhn = bias_ref[:, off_bhhn:off_bhhn + gpad]
    bq = bias_ref[:, off_bq:off_bq + qpad]

    # agent_feature_i : Linear -> ReLU -> Linear -> ReLU (all agents fused).
    x = jnp.maximum(mm(obs, w1_ref[...]) + b1, 0.0)        # (TB, H1TOT)
    x = jnp.maximum(mm(x, w2_ref[...]) + b2, 0.0)          # (TB, GPAD), pad=0

    # agent_gru_i : GRUCell (PyTorch gate order r, z, n), two fused matmuls.
    gi = mm(x, wih_ref[...]) + bih                          # (TB, 3*GPAD)
    gh = mm(h, whh_ref[...])                                # (TB, 3*GPAD)

    r = jax.nn.sigmoid(gi[:, 0:gpad] + gh[:, 0:gpad])
    z = jax.nn.sigmoid(gi[:, gpad:2 * gpad] + gh[:, gpad:2 * gpad])
    n = jnp.tanh(gi[:, 2 * gpad:3 * gpad] +
                 r * (gh[:, 2 * gpad:3 * gpad] + bhhn))
    h_new = (1.0 - z) * n + z * h                           # pad lanes stay 0

    # agent_q_i : Linear(HX, n_actions), block-diagonal over agents.
    q = mm(h_new, wq_ref[...]) + bq                         # (TB, QPAD)

    # Two aligned, unmasked 128-wide stores into one lane-dense output block.
    out_ref[:, 0:gpad] = h_new
    out_ref[:, gpad:gpad + qpad] = q


@functools.partial(jax.jit, static_argnames=("num_agents", "n_obs", "n_actions"))
def qnet_forward(obs, hidden, packed_params, *, num_agents, n_obs, n_actions):
    """obs: (B, A, n_obs), hidden: (B, A, HX) ->
       (q_values (B, A, n_actions), next_hidden (B, A, HX)).
    Matches QNet.forward with recurrent=True."""
    B = obs.shape[0]
    A = num_agents
    HTOT = A * HX
    QTOT = A * n_actions
    H1TOT = A * H1
    OBS_W = A * n_obs
    OBS_PAD = _round_up(OBS_W, 128)
    GPAD = _round_up(HTOT, 128)
    QPAD = _round_up(QTOT, 128)
    OUT_W = GPAD + QPAD

    TB = min(_round_up(B, 8), 512)
    B_pad = _round_up(B, TB)

    off_b1, off_b2, off_bih, off_bhhn, off_bq, _ = _bias_offsets(H1TOT, GPAD, QPAD)

    # Contiguous reshape + zero pad of the activations (no transposes).
    obs_flat = obs.reshape(B, OBS_W).astype(jnp.float32)
    hid_flat = hidden.reshape(B, HTOT).astype(jnp.float32)
    obs_p = jnp.zeros((B_pad, OBS_PAD), jnp.float32).at[:B, :OBS_W].set(obs_flat)
    hid_p = jnp.zeros((B_pad, GPAD), jnp.float32).at[:B, :HTOT].set(hid_flat)

    W1, W2, Wih, Whh, Wq, bias_slab = packed_params

    kernel = functools.partial(
        _qnet_kernel, h1tot=H1TOT, gpad=GPAD, qpad=QPAD,
        off_b1=off_b1, off_b2=off_b2, off_bih=off_bih,
        off_bhhn=off_bhhn, off_bq=off_bq)

    def full(shape):
        return pl.BlockSpec(shape, lambda i: (0, 0))

    out = pl.pallas_call(
        kernel,
        out_shape=jax.ShapeDtypeStruct((B_pad, OUT_W), jnp.float32),
        grid=(B_pad // TB,),
        in_specs=[
            pl.BlockSpec((TB, OBS_PAD), lambda i: (i, 0)),
            pl.BlockSpec((TB, GPAD), lambda i: (i, 0)),
            full(W1.shape), full(W2.shape), full(Wih.shape),
            full(Whh.shape), full(Wq.shape), full(bias_slab.shape),
        ],
        out_specs=pl.BlockSpec((TB, OUT_W), lambda i: (i, 0)),
        compiler_params=pltpu.CompilerParams(dimension_semantics=("parallel",)),
    )(obs_p, hid_p, W1, W2, Wih, Whh, Wq, bias_slab)

    next_hidden = out[:B, :HTOT].reshape(B, A, HX)
    q_values = out[:B, GPAD:GPAD + QTOT].reshape(B, A, n_actions)
    return q_values, next_hidden


# ----------------------------------------------------------------------------
# Parameters: per-agent (PyTorch-like) layout for the reference, plus a packer
# building the padded block-diagonal / slab layout consumed by the kernel.
# ----------------------------------------------------------------------------

def init_params(key, num_agents, n_obs, n_actions):
    """Per-agent parameters stacked along a leading agent axis.  Linear/GRU
    weights are stored already transposed to (in_dim, out_dim) so both the
    reference and the kernel compute x @ W + b (== PyTorch x @ W_pt.T + b).
    GRU gate order along the last axis is PyTorch's (r, z, n)."""
    A = num_agents
    ks = jax.random.split(key, 10)
    scale = 0.1

    def rnd(k, shape):
        return (scale * jax.random.normal(k, shape)).astype(jnp.float32)

    w1 = rnd(ks[0], (A, n_obs, H1))
    b1 = rnd(ks[1], (A, H1))
    w2 = rnd(ks[2], (A, H1, HX))
    b2 = rnd(ks[3], (A, HX))
    wih = rnd(ks[4], (A, HX, 3 * HX))
    bih = rnd(ks[5], (A, 3 * HX))
    whh = rnd(ks[6], (A, HX, 3 * HX))
    bhh = rnd(ks[7], (A, 3 * HX))
    wq = rnd(ks[8], (A, HX, n_actions))
    bq = rnd(ks[9], (A, n_actions))
    return (w1, b1, w2, b2, wih, bih, whh, bhh, wq, bq)


def _block_diag_pad(blocks, rows_pad, cols_pad):
    """Block-diagonal matrix of equally-shaped (r, c) blocks in a zero canvas."""
    r, c = blocks[0].shape
    out = jnp.zeros((rows_pad, cols_pad), jnp.float32)
    for i, blk in enumerate(blocks):
        out = out.at[i * r:(i + 1) * r, i * c:(i + 1) * c].set(blk)
    return out


def pack_params(params, num_agents, n_obs, n_actions):
    """Pack per-agent params into the fused, lane-padded layout:
       W1 (OBS_PAD, H1TOT), W2 (H1TOT, GPAD),
       Wih (GPAD, 3*GPAD), Whh (GPAD, 3*GPAD), Wq (GPAD, QPAD),
       bias slab (1, BW) with 128-aligned segments
         [b1 | b2 | b_ih(r,z,n; r/z hh-folded) | b_hh_n | bq]."""
    (w1, b1, w2, b2, wih, bih, whh, bhh, wq, bq) = params
    A = num_agents
    HTOT = A * HX
    QTOT = A * n_actions
    H1TOT = A * H1
    OBS_W = A * n_obs
    OBS_PAD = _round_up(OBS_W, 128)
    GPAD = _round_up(HTOT, 128)
    QPAD = _round_up(QTOT, 128)

    W1 = _block_diag_pad([w1[a] for a in range(A)], OBS_PAD, H1TOT)
    W2 = _block_diag_pad([w2[a] for a in range(A)], H1TOT, GPAD)
    Wq = _block_diag_pad([wq[a] for a in range(A)], GPAD, QPAD)

    def gate_blocks(w, g):                                    # list of (HX, HX)
        return [w[a, :, g * HX:(g + 1) * HX] for a in range(A)]

    Wih = jnp.zeros((GPAD, 3 * GPAD), jnp.float32)
    Whh = jnp.zeros((GPAD, 3 * GPAD), jnp.float32)
    for g in range(3):                                        # r, z, n
        Wih = Wih.at[:, g * GPAD:(g + 1) * GPAD].set(
            _block_diag_pad(gate_blocks(wih, g), GPAD, GPAD))
        Whh = Whh.at[:, g * GPAD:(g + 1) * GPAD].set(
            _block_diag_pad(gate_blocks(whh, g), GPAD, GPAD))

    def bgate(b, g):                                          # (A*HX,)
        return b[:, g * HX:(g + 1) * HX].reshape(HTOT)

    off_b1, off_b2, off_bih, off_bhhn, off_bq, BW = _bias_offsets(H1TOT, GPAD, QPAD)
    slab = jnp.zeros((1, BW), jnp.float32)
    slab = slab.at[0, off_b1:off_b1 + H1TOT].set(b1.reshape(H1TOT))
    slab = slab.at[0, off_b2:off_b2 + HTOT].set(b2.reshape(HTOT))
    slab = slab.at[0, off_bih + 0 * GPAD: off_bih + 0 * GPAD + HTOT].set(
        bgate(bih, 0) + bgate(bhh, 0))                        # r (hh-folded)
    slab = slab.at[0, off_bih + 1 * GPAD: off_bih + 1 * GPAD + HTOT].set(
        bgate(bih, 1) + bgate(bhh, 1))                        # z (hh-folded)
    slab = slab.at[0, off_bih + 2 * GPAD: off_bih + 2 * GPAD + HTOT].set(
        bgate(bih, 2))                                        # n (ih only)
    slab = slab.at[0, off_bhhn:off_bhhn + HTOT].set(bgate(bhh, 2))   # n (hh)
    slab = slab.at[0, off_bq:off_bq + QTOT].set(bq.reshape(QTOT))

    return (W1, W2, Wih, Whh, Wq, slab)


# ----------------------------------------------------------------------------
# Pure-JAX reference mirroring QNet.forward (recurrent=True).
# ----------------------------------------------------------------------------

def reference_forward(obs, hidden, params):
    (w1, b1, w2, b2, wih, bih, whh, bhh, wq, bq) = params
    A = w1.shape[0]
    qs, nhs = [], []
    for a in range(A):
        x = obs[:, a, :]
        h = hidden[:, a, :]
        x = jnp.maximum(x @ w1[a] + b1[a], 0.0)
        x = jnp.maximum(x @ w2[a] + b2[a], 0.0)
        gi = x @ wih[a] + bih[a]
        gh = h @ whh[a] + bhh[a]
        r = jax.nn.sigmoid(gi[:, 0:HX] + gh[:, 0:HX])
        z = jax.nn.sigmoid(gi[:, HX:2 * HX] + gh[:, HX:2 * HX])
        n = jnp.tanh(gi[:, 2 * HX:3 * HX] + r * gh[:, 2 * HX:3 * HX])
        h_new = (1.0 - z) * n + z * h
        qs.append((h_new @ wq[a] + bq[a])[:, None, :])
        nhs.append(h_new[:, None, :])
    return jnp.concatenate(qs, axis=1), jnp.concatenate(nhs, axis=1)


if __name__ == "__main__":
    num_agents = 3
    n_obs = 16
    n_actions = 5
    batch = 8

    key = jax.random.PRNGKey(0)
    k_obs, k_par = jax.random.split(key, 2)

    obs = jax.random.normal(k_obs, (batch, num_agents, n_obs), dtype=jnp.float32)
    # init_hidden(batch) in the module is zeros:
    hidden = jnp.zeros((batch, num_agents, HX), dtype=jnp.float32)

    params = init_params(k_par, num_agents, n_obs, n_actions)
    packed = pack_params(params, num_agents, n_obs, n_actions)

    q, nh = qnet_forward(obs, hidden, packed,
                         num_agents=num_agents, n_obs=n_obs, n_actions=n_actions)
    q = jax.block_until_ready(q)
    nh = jax.block_until_ready(nh)

    q_ref, nh_ref = reference_forward(obs, hidden, params)
    assert q.shape == (batch, num_agents, n_actions)
    assert nh.shape == (batch, num_agents, HX)
    assert jnp.allclose(q, q_ref, atol=1e-5), "q mismatch vs reference"
    assert jnp.allclose(nh, nh_ref, atol=1e-5), "hidden mismatch vs reference"

    print("KERNEL_OK")
</pallas_src>

<mosaic_0001>
module attributes {stable_mosaic.version = 11 : i64} {
  func.func @_qnet_kernel(%arg0: i32, %arg1: memref<8x128xf32, #tpu.memory_space<vmem>>, %arg2: memref<8x128xf32, #tpu.memory_space<vmem>>, %arg3: memref<128x192xf32, #tpu.memory_space<vmem>>, %arg4: memref<192x128xf32, #tpu.memory_space<vmem>>, %arg5: memref<128x384xf32, #tpu.memory_space<vmem>>, %arg6: memref<128x384xf32, #tpu.memory_space<vmem>>, %arg7: memref<128x128xf32, #tpu.memory_space<vmem>>, %arg8: memref<1x1024xf32, #tpu.memory_space<vmem>>, %arg9: memref<8x256xf32, #tpu.memory_space<vmem>>) attributes {dimension_semantics = [#tpu.dimension_semantics<parallel>], iteration_bounds = array<i64: 1>, scalar_prefetch = 0 : i64, scratch_operands = 0 : i64, tpu.core_type = #tpu.core_type<tc>, window_params = [{transform_indices = @transform_0, window_bounds = array<i64: 8, 128>}, {transform_indices = @transform_1, window_bounds = array<i64: 8, 128>}, {pipeline_mode = #tpu.pipeline_mode<synchronous>, transform_indices = @transform_2, window_bounds = array<i64: 128, 192>}, {pipeline_mode = #tpu.pipeline_mode<synchronous>, transform_indices = @transform_3, window_bounds = array<i64: 192, 128>}, {pipeline_mode = #tpu.pipeline_mode<synchronous>, transform_indices = @transform_4, window_bounds = array<i64: 128, 384>}, {pipeline_mode = #tpu.pipeline_mode<synchronous>, transform_indices = @transform_5, window_bounds = array<i64: 128, 384>}, {pipeline_mode = #tpu.pipeline_mode<synchronous>, transform_indices = @transform_6, window_bounds = array<i64: 128, 128>}, {pipeline_mode = #tpu.pipeline_mode<synchronous>, transform_indices = @transform_7, window_bounds = array<i64: 1, 1024>}, {transform_indices = @transform_8, window_bounds = array<i64: 8, 256>}]} {
    %c0 = arith.constant 0 : index
    %c0_0 = arith.constant 0 : index
    %0 = vector.load %arg1[%c0, %c0_0] : memref<8x128xf32, #tpu.memory_space<vmem>>, vector<8x128xf32>
    %c0_1 = arith.constant 0 : index
    %c0_2 = arith.constant 0 : index
    %1 = vector.load %arg2[%c0_1, %c0_2] : memref<8x128xf32, #tpu.memory_space<vmem>>, vector<8x128xf32>
    %c0_3 = arith.constant 0 : index
    %c0_4 = arith.constant 0 : index
    %2 = vector.load %arg8[%c0_3, %c0_4] : memref<1x1024xf32, #tpu.memory_space<vmem>>, vector<1x192xf32>
    %c0_5 = arith.constant 0 : index
    %c256 = arith.constant 256 : index
    %3 = vector.load %arg8[%c0_5, %c256] : memref<1x1024xf32, #tpu.memory_space<vmem>>, vector<1x128xf32>
    %c0_6 = arith.constant 0 : index
    %c384 = arith.constant 384 : index
    %4 = vector.load %arg8[%c0_6, %c384] : memref<1x1024xf32, #tpu.memory_space<vmem>>, vector<1x384xf32>
    %c0_7 = arith.constant 0 : index
    %c768 = arith.constant 768 : index
    %5 = vector.load %arg8[%c0_7, %c768] : memref<1x1024xf32, #tpu.memory_space<vmem>>, vector<1x128xf32>
    %c0_8 = arith.constant 0 : index
    %c896 = arith.constant 896 : index
    %6 = vector.load %arg8[%c0_8, %c896] : memref<1x1024xf32, #tpu.memory_space<vmem>>, vector<1x128xf32>
    %c0_9 = arith.constant 0 : index
    %c0_10 = arith.constant 0 : index
    %7 = vector.load %arg3[%c0_9, %c0_10] : memref<128x192xf32, #tpu.memory_space<vmem>>, vector<128x192xf32>
    %cst = arith.constant dense<0.000000e+00> : vector<8x192xf32>
    %8 = tpu.matmul %0, %7, %cst {dimension_numbers = #tpu.dot_dimension_numbers<[1], [0], [0], [1], [0, 0, 1, 1], [], []>} : vector<8x128xf32>, vector<128x192xf32>, vector<8x192xf32> -> vector<8x192xf32>
    %9 = vector.broadcast %2 : vector<1x192xf32> to vector<8x192xf32>
    %10 = arith.addf %8, %9 : vector<8x192xf32>
    %cst_11 = arith.constant 0.000000e+00 : f32
    %11 = vector.broadcast %cst_11 : f32 to vector<8x192xf32>
    %12 = arith.maximumf %10, %11 : vector<8x192xf32>
    %c0_12 = arith.constant 0 : index
    %c0_13 = arith.constant 0 : index
    %13 = vector.load %arg4[%c0_12, %c0_13] : memref<192x128xf32, #tpu.memory_space<vmem>>, vector<192x128xf32>
    %cst_14 = arith.constant dense<0.000000e+00> : vector<8x128xf32>
    %14 = tpu.matmul %12, %13, %cst_14 {dimension_numbers = #tpu.dot_dimension_numbers<[1], [0], [0], [1], [0, 0, 1, 1], [], []>} : vector<8x192xf32>, vector<192x128xf32>, vector<8x128xf32> -> vector<8x128xf32>
    %15 = vector.broadcast %3 : vector<1x128xf32> to vector<8x128xf32>
    %16 = arith.addf %14, %15 : vector<8x128xf32>
    %cst_15 = arith.constant 0.000000e+00 : f32
    %17 = vector.broadcast %cst_15 : f32 to vector<8x128xf32>
    %18 = arith.maximumf %16, %17 : vector<8x128xf32>
    %c0_16 = arith.constant 0 : index
    %c0_17 = arith.constant 0 : index
    %19 = vector.load %arg5[%c0_16, %c0_17] : memref<128x384xf32, #tpu.memory_space<vmem>>, vector<128x384xf32>
    %cst_18 = arith.constant dense<0.000000e+00> : vector<8x384xf32>
    %20 = tpu.matmul %18, %19, %cst_18 {dimension_numbers = #tpu.dot_dimension_numbers<[1], [0], [0], [1], [0, 0, 1, 1], [], []>} : vector<8x128xf32>, vector<128x384xf32>, vector<8x384xf32> -> vector<8x384xf32>
    %21 = vector.broadcast %4 : vector<1x384xf32> to vector<8x384xf32>
    %22 = arith.addf %20, %21 : vector<8x384xf32>
    %c0_19 = arith.constant 0 : index
    %c0_20 = arith.constant 0 : index
    %23 = vector.load %arg6[%c0_19, %c0_20] : memref<128x384xf32, #tpu.memory_space<vmem>>, vector<128x384xf32>
    %cst_21 = arith.constant dense<0.000000e+00> : vector<8x384xf32>
    %24 = tpu.matmul %1, %23, %cst_21 {dimension_numbers = #tpu.dot_dimension_numbers<[1], [0], [0], [1], [0, 0, 1, 1], [], []>} : vector<8x128xf32>, vector<128x384xf32>, vector<8x384xf32> -> vector<8x384xf32>
    %25 = vector.extract_strided_slice %22 {offsets = [0, 0], sizes = [8, 128], strides = [1, 1]} : vector<8x384xf32> to vector<8x128xf32>
    %26 = vector.extract_strided_slice %24 {offsets = [0, 0], sizes = [8, 128], strides = [1, 1]} : vector<8x384xf32> to vector<8x128xf32>
    %27 = arith.addf %25, %26 : vector<8x128xf32>
    %28 = arith.negf %27 : vector<8x128xf32>
    %29 = math.exp %28 : vector<8x128xf32>
    %cst_22 = arith.constant 1.000000e+00 : f32
    %30 = vector.broadcast %cst_22 : f32 to vector<8x128xf32>
    %31 = arith.addf %30, %29 : vector<8x128xf32>
    %32 = arith.divf %30, %31 : vector<8x128xf32>
    %33 = vector.extract_strided_slice %22 {offsets = [0, 128], sizes = [8, 128], strides = [1, 1]} : vector<8x384xf32> to vector<8x128xf32>
    %34 = vector.extract_strided_slice %24 {offsets = [0, 128], sizes = [8, 128], strides = [1, 1]} : vector<8x384xf32> to vector<8x128xf32>
    %35 = arith.addf %33, %34 : vector<8x128xf32>
    %36 = arith.negf %35 : vector<8x128xf32>
    %37 = math.exp %36 : vector<8x128xf32>
    %cst_23 = arith.constant 1.000000e+00 : f32
    %38 = vector.broadcast %cst_23 : f32 to vector<8x128xf32>
    %39 = arith.addf %38, %37 : vector<8x128xf32>
    %40 = arith.divf %38, %39 : vector<8x128xf32>
    %41 = vector.extract_strided_slice %22 {offsets = [0, 256], sizes = [8, 128], strides = [1, 1]} : vector<8x384xf32> to vector<8x128xf32>
    %42 = vector.extract_strided_slice %24 {offsets = [0, 256], sizes = [8, 128], strides = [1, 1]} : vector<8x384xf32> to vector<8x128xf32>
    %43 = vector.broadcast %5 : vector<1x128xf32> to vector<8x128xf32>
    %44 = arith.addf %42, %43 : vector<8x128xf32>
    %45 = arith.mulf %32, %44 : vector<8x128xf32>
    %46 = arith.addf %41, %45 : vector<8x128xf32>
    %47 = math.tanh %46 : vector<8x128xf32>
    %cst_24 = arith.constant 1.000000e+00 : f32
    %48 = vector.broadcast %cst_24 : f32 to vector<8x128xf32>
    %49 = arith.subf %48, %40 : vector<8x128xf32>
    %50 = arith.mulf %49, %47 : vector<8x128xf32>
    %51 = arith.mulf %40, %1 : vector<8x128xf32>
    %52 = arith.addf %50, %51 : vector<8x128xf32>
    %c0_25 = arith.constant 0 : index
    %c0_26 = arith.constant 0 : index
    %53 = vector.load %arg7[%c0_25, %c0_26] : memref<128x128xf32, #tpu.memory_space<vmem>>, vector<128x128xf32>
    %cst_27 = arith.constant dense<0.000000e+00> : vector<8x128xf32>
    %54 = tpu.matmul %52, %53, %cst_27 {dimension_numbers = #tpu.dot_dimension_numbers<[1], [0], [0], [1], [0, 0, 1, 1], [], []>} : vector<8x128xf32>, vector<128x128xf32>, vector<8x128xf32> -> vector<8x128xf32>
    %55 = vector.broadcast %6 : vector<1x128xf32> to vector<8x128xf32>
    %56 = arith.addf %54, %55 : vector<8x128xf32>
    %c0_28 = arith.constant 0 : index
    %c0_29 = arith.constant 0 : index
    %57 = vector.load %arg9[%c0_28, %c0_29] : memref<8x256xf32, #tpu.memory_space<vmem>>, vector<8x128xf32>
    tpu.vector_store %arg9[%c0_28, %c0_29], %52 {strides = array<i32>} : memref<8x256xf32, #tpu.memory_space<vmem>>, vector<8x128xf32>,
    %c0_30 = arith.constant 0 : index
    %c128 = arith.constant 128 : index
    %58 = vector.load %arg9[%c0_30, %c128] : memref<8x256xf32, #tpu.memory_space<vmem>>, vector<8x128xf32>
    tpu.vector_store %arg9[%c0_30, %c128], %56 {strides = array<i32>} : memref<8x256xf32, #tpu.memory_space<vmem>>, vector<8x128xf32>,
    return
  }
  func.func @transform_0(%arg0: i32) -> (i32, i32) {
    %c0_i32 = arith.constant 0 : i32
    %c0_i32_0 = arith.constant 0 : i32
    return %arg0, %c0_i32 : i32, i32
  }
  func.func @transform_1(%arg0: i32) -> (i32, i32) {
    %c0_i32 = arith.constant 0 : i32
    %c0_i32_0 = arith.constant 0 : i32
    return %arg0, %c0_i32 : i32, i32
  }
  func.func @transform_2(%arg0: i32) -> (i32, i32) {
    %c0_i32 = arith.constant 0 : i32
    %c0_i32_0 = arith.constant 0 : i32
    %c0_i32_1 = arith.constant 0 : i32
    return %c0_i32, %c0_i32_0 : i32, i32
  }
  func.func @transform_3(%arg0: i32) -> (i32, i32) {
    %c0_i32 = arith.constant 0 : i32
    %c0_i32_0 = arith.constant 0 : i32
    %c0_i32_1 = arith.constant 0 : i32
    return %c0_i32, %c0_i32_0 : i32, i32
  }
  func.func @transform_4(%arg0: i32) -> (i32, i32) {
    %c0_i32 = arith.constant 0 : i32
    %c0_i32_0 = arith.constant 0 : i32
    %c0_i32_1 = arith.constant 0 : i32
    return %c0_i32, %c0_i32_0 : i32, i32
  }
  func.func @transform_5(%arg0: i32) -> (i32, i32) {
    %c0_i32 = arith.constant 0 : i32
    %c0_i32_0 = arith.constant 0 : i32
    %c0_i32_1 = arith.constant 0 : i32
    return %c0_i32, %c0_i32_0 : i32, i32
  }
  func.func @transform_6(%arg0: i32) -> (i32, i32) {
    %c0_i32 = arith.constant 0 : i32
    %c0_i32_0 = arith.constant 0 : i32
    %c0_i32_1 = arith.constant 0 : i32
    return %c0_i32, %c0_i32_0 : i32, i32
  }
  func.func @transform_7(%arg0: i32) -> (i32, i32) {
    %c0_i32 = arith.constant 0 : i32
    %c0_i32_0 = arith.constant 0 : i32
    %c0_i32_1 = arith.constant 0 : i32
    return %c0_i32, %c0_i32_0 : i32, i32
  }
  func.func @transform_8(%arg0: i32) -> (i32, i32) {
    %c0_i32 = arith.constant 0 : i32
    %c0_i32_0 = arith.constant 0 : i32
    return %arg0, %c0_i32 : i32, i32
  }
}

</mosaic_0001>

<bundles_post_ra>
// kernel: qnet_forward.1
= control target key start
LH: loop header
LB: loop body
LE: loop exit
PB: predicated region body
PF: predicated region fallthrough
CT: control target
= control target key end

     0   :  { %13 = vsyncpa [#allocation3], 0  ;;  %s1792_s0 = inlined_call_operand.vmem [shape: f32[8,128], index: 0, kind: input, shape index: {}]   ;;  %s1793_s1 = inlined_call_operand.vmem [shape: f32[8,128], index: 1, kind: input, shape index: {}]   ;;  %s1794_s2 = inlined_call_operand.vmem [shape: f32[128,192], index: 2, kind: input, shape index: {}]   ;;  %s1795_s3 = inlined_call_operand.hbm [shape: f32[192,128], index: 3, kind: input, shape index: {}]   ;;  %s1796_s4 = inlined_call_operand.vmem [shape: f32[128,384], index: 4, kind: input, shape index: {}]   ;;  %s1797_s5 = inlined_call_operand.vmem [shape: f32[128,384], index: 5, kind: input, shape index: {}]   ;;  %s1798_s6 = inlined_call_operand.hbm [shape: f32[128,128], index: 6, kind: input, shape index: {}]   ;;  %s1799_s7 = inlined_call_operand.vmem [shape: f32[1,1024], index: 7, kind: input, shape index: {}]   ;;  %s1800_s8 = inlined_call_operand.vmem [shape: f32[8,256], index: 8, kind: output, shape index: {}]  }
   0x1   :  { %14 = vsyncpa [#allocation5], 0  ;;  %s1242_s27 = smov [#allocation2]   ;;  %s1194_s9 = scalar_lea.hbm %s1795_s3, 3072 }
   0x2   :  { %s26_s28 = sshll.u32 %s1242_s27, 4  ;;  %p1195_p0 = scmp.ne.s32.totalorder %s1795_s3, %s1194_s9  ;;  %s27_s28 = int_to_ptr.vmem [resolvable:$true] %s26_s28 }
   0x3   :  { %p1198_p1 = scmp.lt.u32.totalorder %s1194_s9, %s1795_s3 }
   0x5   :  { %p1200_p2 = pnand %p1198_p1, %p1195_p0 }
   0x7   :  { %1203 = shalt.err (!%p1200_p2)
}
   0x8   :  { %s1204_s14 = scalar_lea.vmem %s27_s28, 3072  ;;  %p1209_p4 = scmp.lt.s32.totalorder %s27_s28, %s27_s28 }
   0x9   :  { %p1205_p3 = scmp.ne.s32.totalorder %s27_s28, %s1204_s14  ;;  %p1210_p5 = scmp.lt.s32.totalorder %s1204_s14, %s1204_s14 }
   0xb   :  { %p1211_p6 = por %p1210_p5, %p1209_p4 }
   0xd   :  { %p1212_p7 = pnand %p1211_p6, %p1205_p3 }
   0xf   :  { %1215 = shalt.err (!%p1212_p7)
}
  0x10   :  { %s1243_s15 = smov 128   ;;  %s1244_s16 = smov 8  }
  0x11   :  { %32 = dma.hbm_to_vmem [thread:$0]  %s1795_s3, 3072, %s27_s28, [#allocation3], %s1243_s15, %s1243_s15, %s1244_s16  }
  0x12   :  { %s1245_s19 = smov [#allocation4]   ;;  %s1216_s23 = scalar_lea.hbm %s1798_s6, 2048 }
  0x13   :  { %s42_s20 = sshll.u32 %s1245_s19, 4  ;;  %p1217_p8 = scmp.ne.s32.totalorder %s1798_s6, %s1216_s23  ;;  %s43_s20 = int_to_ptr.vmem [resolvable:$true] %s42_s20 }
  0x14   :  { %p1220_p9 = scmp.lt.u32.totalorder %s1216_s23, %s1798_s6 }
  0x16   :  { %p1222_p10 = pnand %p1220_p9, %p1217_p8 }
  0x18   :  { %1225 = shalt.err (!%p1222_p10)
}
  0x19   :  { %s1226_s29 = scalar_lea.vmem %s43_s20, 2048  ;;  %p1231_p12 = scmp.lt.s32.totalorder %s43_s20, %s43_s20 }
  0x1a   :  { %p1227_p11 = scmp.ne.s32.totalorder %s43_s20, %s1226_s29  ;;  %p1232_p13 = scmp.lt.s32.totalorder %s1226_s29, %s1226_s29 }
  0x1c   :  { %p1233_p0 = por %p1232_p13, %p1231_p12 }
  0x1e   :  { %p1234_p1 = pnand %p1233_p0, %p1227_p11 }
  0x20   :  { %1237 = shalt.err (!%p1234_p1)
}
  0x21   :  { %48 = dma.hbm_to_vmem [thread:$0]  %s1798_s6, 2048, %s43_s20, [#allocation5], %s1243_s15, %s1243_s15, %s1244_s16  }
  0x22   :  { %1238 = dma.done.wait [#allocation3], 3072  }
  0x23   :  { %1239 = vsyncadd [#allocation3], 4294964224 }
  0x24   :  { %1240 = dma.done.wait [#allocation5], 2048  }
  0x25   :  { %1241 = vsyncadd [#allocation5], 4294965248  ;;  %v1246_v0 = vmov 0.0   ;;  %v1247_v1 = vmov 0.0|0.0   ;;  %v65_v2 = vld [vmem:[%s1794_s2 + $0x8] sm:$0xff]  ;;  %v67_v3 = vld [vmem:[%s1794_s2 + $0x18] sm:$0xff] }
  0x26   :  { %171 = vmatprep.mubr.f32.mxu0 %v1246_v0  ;;  %1001 = vmatprep.subr.bf16.mxu1 %v1247_v1  ;;  %v64_v4 = vld [vmem:[%s1794_s2] sm:$0xff]  ;;  %v969_v5 = vpack.c.bf16 %v67_v3, %v65_v2  ;;  %v66_v6 = vld [vmem:[%s1794_s2 + $0x10] sm:$0xff]  ;;  %v69_v7 = vld [vmem:[%s1794_s2 + $0x28] sm:$0xff]  ;;  %vm210_vm0 = vcmask 523264   ;;  %vm1248_vm1 = vmmov 0  }
  0x27   :  { %v71_v8 = vld [vmem:[%s1794_s2 + $0x38] sm:$0xff]  ;;  %v971_v9 = vpack.c.bf16 %v66_v6, %v64_v4  ;;  %v68_v11 = vld [vmem:[%s1794_s2 + $0x20] sm:$0xff]  ;;  %v70_v12 = vld [vmem:[%s1794_s2 + $0x30] sm:$0xff] }
  0x28   :  { %v973_v10 = vpack.c.bf16 %v71_v8, %v69_v7  ;;  %v73_v13 = vld [vmem:[%s1794_s2 + $0x48] sm:$0xff]  ;;  %970 = vmatprep.subr.bf16.mxu0 %v969_v5  ;;  %v75_v14 = vld [vmem:[%s1794_s2 + $0x58] sm:$0xff]  ;;  %v975_v15 = vpack.c.bf16 %v70_v12, %v68_v11  ;;  %v72_v17 = vld [vmem:[%s1794_s2 + $0x40] sm:$0xff] }
  0x29   :  { %972 = vmatpush1.bf16.msra.mxu0 %v971_v9  ;;  %v977_v16 = vpack.c.bf16 %v75_v14, %v73_v13  ;;  %v74_v18 = vld [vmem:[%s1794_s2 + $0x50] sm:$0xff]  ;;  %v77_v19 = vld [vmem:[%s1794_s2 + $0x68] sm:$0xff]  ;;  %v79_v20 = vld [vmem:[%s1794_s2 + $0x78] sm:$0xff] }
  0x2a   :  { %974 = vmatprep.subr.bf16.mxu0 %v973_v10  ;;  %v979_v21 = vpack.c.bf16 %v74_v18, %v72_v17  ;;  %v981_v22 = vpack.c.bf16 %v79_v20, %v77_v19  ;;  %v76_v23 = vld [vmem:[%s1794_s2 + $0x60] sm:$0xff]  ;;  %v78_v24 = vld [vmem:[%s1794_s2 + $0x70] sm:$0xff]  ;;  %v81_v25 = vld [vmem:[%s1794_s2 + $0x88] sm:$0xff] }
  0x2b   :  { %v83_v26 = vld [vmem:[%s1794_s2 + $0x98] sm:$0xff]  ;;  %v180_v27 = vld [vmem:[#allocation2] sm:$0xff]  ;;  %v181_v28 = vld [vmem:[#allocation2 + $0x8] sm:$0xff]  ;;  %v983_v30 = vpack.c.bf16 %v78_v24, %v76_v23 }
  0x2c   :  { %v182_v29 = vld [vmem:[#allocation2 + $0x10] sm:$0xff]  ;;  %v1002_v31 = vpack.c.bf16 %v181_v28, %v180_v27  ;;  %v183_v32 = vld [vmem:[#allocation2 + $0x18] sm:$0xff]  ;;  %v985_v33 = vpack.c.bf16 %v83_v26, %v81_v25  ;;  %v80_v34 = vld [vmem:[%s1794_s2 + $0x80] sm:$0xff] }
  0x2d   :  { %976 = vmatpush1.bf16.msra.mxu0 %v975_v15  ;;  %v82_v35 = vld [vmem:[%s1794_s2 + $0x90] sm:$0xff]  ;;  %v85_v36 = vld [vmem:[%s1794_s2 + $0xa8] sm:$0xff]  ;;  %v87_v37 = vld [vmem:[%s1794_s2 + $0xb8] sm:$0xff]  ;;  %v1005_v38 = vpack.c.bf16 %v183_v32, %v182_v29 }
  0x2e   :  { %978 = vmatprep.subr.bf16.mxu0 %v977_v16  ;;  %1003 = vmatpush1.bf16.msra.mxu1 %v1002_v31  ;;  %v184_v39 = vld [vmem:[#allocation2 + $0x20] sm:$0xff]  ;;  %v185_v40 = vld [vmem:[#allocation2 + $0x28] sm:$0xff]  ;;  %v987_v41 = vpack.c.bf16 %v82_v35, %v80_v34  ;;  %v989_v42 = vpack.c.bf16 %v87_v37, %v85_v36  ;;  %v86_v44 = vld [vmem:[%s1794_s2 + $0xb0] sm:$0xff] }
  0x2f   :  { %1004 = vmatprep.subr.bf16.mxu1 %v1247_v1  ;;  %v84_v43 = vld [vmem:[%s1794_s2 + $0xa0] sm:$0xff]  ;;  %v89_v45 = vld [vmem:[%s1794_s2 + $0xc8] sm:$0xff]  ;;  %v91_v46 = vld [vmem:[%s1794_s2 + $0xd8] sm:$0xff]  ;;  %v1008_v47 = vpack.c.bf16 %v185_v40, %v184_v39 }
  0x30   :  { %v186_v48 = vld [vmem:[#allocation2 + $0x30] sm:$0xff]  ;;  %v187_v49 = vld [vmem:[#allocation2 + $0x38] sm:$0xff]  ;;  %v991_v50 = vpack.c.bf16 %v86_v44, %v84_v43  ;;  %v993_v51 = vpack.c.bf16 %v91_v46, %v89_v45  ;;  %v88_v52 = vld [vmem:[%s1794_s2 + $0xc0] sm:$0xff] }
  0x31   :  { %980 = vmatpush1.bf16.msra.mxu0 %v979_v21  ;;  %v90_v53 = vld [vmem:[%s1794_s2 + $0xd0] sm:$0xff]  ;;  %v93_v54 = vld [vmem:[%s1794_s2 + $0xe8] sm:$0xff]  ;;  %v95_v55 = vld [vmem:[%s1794_s2 + $0xf8] sm:$0xff]  ;;  %v1011_v56 = vpack.c.bf16 %v187_v49, %v186_v48 }
  0x32   :  { %982 = vmatprep.subr.bf16.mxu0 %v981_v22  ;;  %1006 = vmatpush1.bf16.msra.mxu1 %v1005_v38  ;;  %v188_v57 = vld [vmem:[#allocation2 + $0x40] sm:$0xff]  ;;  %v189_v58 = vld [vmem:[#allocation2 + $0x48] sm:$0xff]  ;;  %v995_v59 = vpack.c.bf16 %v90_v53, %v88_v52  ;;  %v997_v60 = vpack.c.bf16 %v95_v55, %v93_v54  ;;  %v94_v62 = vld [vmem:[%s1794_s2 + $0xf0] sm:$0xff] }
  0x33   :  { %1007 = vmatprep.subr.bf16.mxu1 %v1247_v1  ;;  %v92_v61 = vld [vmem:[%s1794_s2 + $0xe0] sm:$0xff]  ;;  %v1014_v63 = vpack.c.bf16 %v189_v58, %v188_v57  ;;  %v190_v2 = vld [vmem:[#allocation2 + $0x50] sm:$0xff]  ;;  %v191_v3 = vld [vmem:[#allocation2 + $0x58] sm:$0xff] }
  0x34   :  { %v999_v4 = vpack.c.bf16 %v94_v62, %v92_v61  ;;  %v1017_v5 = vpack.c.bf16 %v191_v3, %v190_v2  ;;  %v192_v6 = vld [vmem:[#allocation2 + $0x60] sm:$0xff]  ;;  %v193_v7 = vld [vmem:[#allocation2 + $0x68] sm:$0xff]  ;;  %v194_v10 = vld [vmem:[#allocation2 + $0x70] sm:$0xff] }
  0x35   :  { %984 = vmatpush1.bf16.msra.mxu0 %v983_v30  ;;  %v57_v8 = vld [vmem:[%s1792_s0] sm:$0xff]  ;;  %v1020_v9 = vpack.c.bf16 %v193_v7, %v192_v6  ;;  %v195_v11 = vld [vmem:[#allocation2 + $0x78] sm:$0xff]  ;;  %v197_v14 = vld [vmem:[#allocation2 + $0x88] sm:$0xff] }
  0x36   :  { %986 = vmatprep.subr.bf16.mxu0 %v985_v33  ;;  %1009 = vmatpush1.bf16.msra.mxu1 %v1008_v47  ;;  %v1023_v12 = vpack.c.bf16 %v195_v11, %v194_v10  ;;  %v196_v13 = vld [vmem:[#allocation2 + $0x80] sm:$0xff]  ;;  %v198_v16 = vld [vmem:[#allocation2 + $0x90] sm:$0xff]  ;;  %v199_v17 = vld [vmem:[#allocation2 + $0x98] sm:$0xff] }
  0x37   :  { %1010 = vmatprep.subr.bf16.mxu1 %v1247_v1  ;;  %v1026_v15 = vpack.c.bf16 %v197_v14, %v196_v13  ;;  %v1029_v18 = vpack.c.bf16 %v199_v17, %v198_v16  ;;  %v200_v19 = vld [vmem:[#allocation2 + $0xa0] sm:$0xff]  ;;  %v201_v20 = vld [vmem:[#allocation2 + $0xa8] sm:$0xff]  ;;  %v202_v22 = vld [vmem:[#allocation2 + $0xb0] sm:$0xff] }
  0x38   :  { %v1032_v21 = vpack.c.bf16 %v201_v20, %v200_v19  ;;  %v203_v23 = vld [vmem:[#allocation2 + $0xb8] sm:$0xff]  ;;  %v286_v25 = vld [vmem:[%s1796_s4 + $0x8] sm:$0xff]  ;;  %v289_v26 = vld [vmem:[%s1796_s4 + $0x20] sm:$0xff] }
  0x39   :  { %988 = vmatpush1.bf16.msra.mxu0 %v987_v41  ;;  %v1035_v24 = vpack.c.bf16 %v203_v23, %v202_v22  ;;  %v285_v27 = vld [vmem:[%s1796_s4] sm:$0xff]  ;;  %v1037_v28 = vpack.c.bf16 %v289_v26, %v286_v25  ;;  %v288_v29 = vld [vmem:[%s1796_s4 + $0x18] sm:$0xff]  ;;  %v295_v32 = vld [vmem:[%s1796_s4 + $0x50] sm:$0xff] }
  0x3a   :  { %990 = vmatprep.subr.bf16.mxu0 %v989_v42  ;;  %1012 = vmatpush1.bf16.msra.mxu1 %v1011_v56  ;;  %v1039_v30 = vpack.c.bf16 %v288_v29, %v285_v27  ;;  %v292_v31 = vld [vmem:[%s1796_s4 + $0x38] sm:$0xff]  ;;  %v291_v33 = vld [vmem:[%s1796_s4 + $0x30] sm:$0xff]  ;;  %v294_v35 = vld [vmem:[%s1796_s4 + $0x48] sm:$0xff] }
  0x3b   :  { %1013 = vmatprep.subr.bf16.mxu1 %v1247_v1  ;;  %v1041_v34 = vpack.c.bf16 %v295_v32, %v292_v31  ;;  %v1043_v36 = vpack.c.bf16 %v294_v35, %v291_v33  ;;  %v298_v37 = vld [vmem:[%s1796_s4 + $0x68] sm:$0xff]  ;;  %v301_v38 = vld [vmem:[%s1796_s4 + $0x80] sm:$0xff]  ;;  %v300_v41 = vld [vmem:[%s1796_s4 + $0x78] sm:$0xff] }
  0x3c   :  { %v297_v39 = vld [vmem:[%s1796_s4 + $0x60] sm:$0xff]  ;;  %v1045_v40 = vpack.c.bf16 %v301_v38, %v298_v37  ;;  %v304_v43 = vld [vmem:[%s1796_s4 + $0x98] sm:$0xff]  ;;  %v307_v44 = vld [vmem:[%s1796_s4 + $0xb0] sm:$0xff] }
  0x3d   :  { %992 = vmatpush1.bf16.msra.mxu0 %v991_v50  ;;  %v1047_v42 = vpack.c.bf16 %v300_v41, %v297_v39  ;;  %v303_v45 = vld [vmem:[%s1796_s4 + $0x90] sm:$0xff]  ;;  %v1049_v46 = vpack.c.bf16 %v307_v44, %v304_v43  ;;  %v306_v47 = vld [vmem:[%s1796_s4 + $0xa8] sm:$0xff]  ;;  %v313_v50 = vld [vmem:[%s1796_s4 + $0xe0] sm:$0xff] }
  0x3e   :  { %994 = vmatprep.subr.bf16.mxu0 %v993_v51  ;;  %1015 = vmatpush1.bf16.msra.mxu1 %v1014_v63  ;;  %v1051_v48 = vpack.c.bf16 %v306_v47, %v303_v45  ;;  %v310_v49 = vld [vmem:[%s1796_s4 + $0xc8] sm:$0xff]  ;;  %v309_v51 = vld [vmem:[%s1796_s4 + $0xc0] sm:$0xff]  ;;  %v312_v53 = vld [vmem:[%s1796_s4 + $0xd8] sm:$0xff] }
  0x3f   :  { %1016 = vmatprep.subr.bf16.mxu1 %v1247_v1  ;;  %v1053_v52 = vpack.c.bf16 %v313_v50, %v310_v49  ;;  %v1055_v54 = vpack.c.bf16 %v312_v53, %v309_v51  ;;  %v316_v55 = vld [vmem:[%s1796_s4 + $0xf8] sm:$0xff]  ;;  %v319_v56 = vld [vmem:[%s1796_s4 + $0x110] sm:$0xff]  ;;  %v322_v61 = vld [vmem:[%s1796_s4 + $0x128] sm:$0xff] }
  0x40   :  { %v315_v57 = vld [vmem:[%s1796_s4 + $0xf0] sm:$0xff]  ;;  %v1057_v58 = vpack.c.bf16 %v319_v56, %v316_v55  ;;  %v325_v62 = vld [vmem:[%s1796_s4 + $0x140] sm:$0xff]  ;;  %v324_v3 = vld [vmem:[%s1796_s4 + $0x138] sm:$0xff] }
  0x41   :  { %996 = vmatpush1.bf16.msra.mxu0 %v995_v59  ;;  %v318_v59 = vld [vmem:[%s1796_s4 + $0x108] sm:$0xff]  ;;  %v321_v63 = vld [vmem:[%s1796_s4 + $0x120] sm:$0xff]  ;;  %v1061_v2 = vpack.c.bf16 %v325_v62, %v322_v61  ;;  %v296_v22 = vld [vmem:[%s1796_s4 + $0x58] sm:$0xff] }
  0x42   :  { %998 = vmatprep.subr.bf16.mxu0 %v997_v60  ;;  %1018 = vmatpush1.bf16.msra.mxu1 %v1017_v5  ;;  %v1059_v60 = vpack.c.bf16 %v318_v59, %v315_v57  ;;  %v97_v5 = vlaneseq  ;;  %v290_v16 = vld [vmem:[%s1796_s4 + $0x28] sm:$0xff]  ;;  %v305_v27 = vld [vmem:[%s1796_s4 + $0xa0] sm:$0xff]  ;;  %v328_v39 = vld [vmem:[%s1796_s4 + $0x158] sm:$0xff] }
  0x43   :  { %1019 = vmatprep.subr.bf16.mxu1 %v1247_v1  ;;  %v302_v25 = vld [vmem:[%s1796_s4 + $0x88] sm:$0xff]  ;;  %v317_v33 = vld [vmem:[%s1796_s4 + $0x100] sm:$0xff]  ;;  %v493_v53 = vld [vmem:[%s1797_s5 + $0x18] sm:$0xff] }
  0x44   :  { %v1516_v6 = vshrl.u32 %v97_v5, 7  ;;  %v314_v31 = vld [vmem:[%s1796_s4 + $0xe8] sm:$0xff]  ;;  %v329_v45 = vld [vmem:[%s1796_s4 + $0x160] sm:$0xff]  ;;  %v497_v57 = vld [vmem:[%s1797_s5 + $0x38] sm:$0xff] }
  0x45   :  { %1000 = vmatpush1.bf16.msra.mxu0 %v999_v4  ;;  %v1063_v4 = vpack.c.bf16 %v324_v3, %v321_v63  ;;  %v326_v37 = vld [vmem:[%s1796_s4 + $0x148] sm:$0xff]  ;;  %v494_v49 = vld [vmem:[%s1797_s5 + $0x20] sm:$0xff]  ;;  %v496_v62 = vld [vmem:[%s1797_s5 + $0x30] sm:$0xff] }
  0x46   :  { %1021 = vmatpush1.bf16.msra.mxu1 %v1020_v9  ;;  %1038 = vmatprep.subr.bf16.mxu0 %v1037_v28  ;;  %v99_v7 = vsub.s32 0, %v1516_v6  ;;  %v103_v9 = vsub.s32 1, %v1516_v6  ;;  %v308_v28 = vld [vmem:[%s1796_s4 + $0xb8] sm:$0xff]  ;;  %v330_v43 = vld [vmem:[%s1796_s4 + $0x168] sm:$0xff]  ;;  %v807_v51 = vld [vmem:[%s1799_s7 + $0x2] ss:$0 sm:$0xff] }
  0x47   :  { %1022 = vmatprep.subr.bf16.mxu1 %v1247_v1  ;;  %v1079_v29 = vpack.c.bf16 %v308_v28, %v305_v27  ;;  %v495_v55 = vld [vmem:[%s1797_s5 + $0x28] sm:$0xff]  ;;  %v498_v5 = vld [vmem:[%s1797_s5 + $0x40] sm:$0xff]  ;;  %v513_v27 = vld [vmem:[%s1797_s5 + $0xb8] sm:$0xff] }
  0x48   :  { %172 = vmatmul.mubr.f32.vlgmr.msra.gmra.mrb[0].mxu0 %v57_v8  ;;  %v59_v8 = vld [vmem:[%s1799_s7] sm:$0x3]  ;;  %v515_v28 = vld [vmem:[%s1797_s5 + $0xc8] sm:$0xff] }
  0x49   :  { %413 = vmatprep.mubr.f32.mxu0 %v1246_v0  ;;  %1040 = vmatpush1.bf16.msra.mxu0 %v1039_v30  ;;  %v100_v10 = vrot.slane %v59_v8, %v99_v7  ;;  %v104_v11 = vrot.slane %v59_v8, %v103_v9  ;;  %v311_v30 = vld [vmem:[%s1796_s4 + $0xd0] sm:$0xff]  ;;  %v501_v8 = vld [vmem:[%s1797_s5 + $0x58] sm:$0xff] }
  0x4a   :  { %1024 = vmatpush1.bf16.msra.mxu1 %v1023_v12  ;;  %1042 = vmatprep.subr.bf16.mxu0 %v1041_v34  ;;  %v1082_v32 = vpack.c.bf16 %v314_v31, %v311_v30  ;;  %v320_v34 = vld [vmem:[%s1796_s4 + $0x118] sm:$0xff]  ;;  %v514_v31 = vld [vmem:[%s1797_s5 + $0xc0] sm:$0xff] }
  0x4b   :  { %1025 = vmatprep.subr.bf16.mxu1 %v1247_v1  ;;  %v1085_v35 = vpack.c.bf16 %v320_v34, %v317_v33  ;;  %v517_v34 = vld [vmem:[%s1797_s5 + $0xd8] sm:$0xff] }
  0x4d   :  { %1044 = vmatpush1.bf16.msra.mxu0 %v1043_v36  ;;  %v323_v36 = vld [vmem:[%s1796_s4 + $0x130] sm:$0xff] }
  0x4e   :  { %1027 = vmatpush1.bf16.msra.mxu1 %v1026_v15  ;;  %1046 = vmatprep.subr.bf16.mxu0 %v1045_v40  ;;  %v287_v15 = vld [vmem:[%s1796_s4 + $0x10] sm:$0xff]  ;;  %v1088_v38 = vpack.c.bf16 %v326_v37, %v323_v36  ;;  %v519_v36 = vld [vmem:[%s1797_s5 + $0xe8] sm:$0xff]  ;;  %v521_v37 = vld [vmem:[%s1797_s5 + $0xf8] sm:$0xff] }
  0x4f   :  { %1028 = vmatprep.subr.bf16.mxu1 %v1247_v1  ;;  %v1070_v19 = vpack.c.bf16 %v290_v16, %v287_v15  ;;  %v331_v40 = vld [vmem:[%s1796_s4 + $0x170] sm:$0xff]  ;;  %v505_v16 = vld [vmem:[%s1797_s5 + $0x78] sm:$0xff] }
  0x50   :  { %v1065_v41 = vpack.c.bf16 %v331_v40, %v328_v39  ;;  %v1111_v39 = vpack.c.bf16 %v517_v34, %v514_v31  ;;  %v520_v40 = vld [vmem:[%s1797_s5 + $0xf0] sm:$0xff] }
  0x51   :  { %1048 = vmatpush1.bf16.msra.mxu0 %v1047_v42  ;;  %v327_v42 = vld [vmem:[%s1796_s4 + $0x150] sm:$0xff] }
  0x52   :  { %1030 = vmatpush1.bf16.msra.mxu1 %v1029_v18  ;;  %1050 = vmatprep.subr.bf16.mxu0 %v1049_v46  ;;  %v1067_v44 = vpack.c.bf16 %v330_v43, %v327_v42  ;;  %v332_v46 = vld [vmem:[%s1796_s4 + $0x178] sm:$0xff]  ;;  %v523_v43 = vld [vmem:[%s1797_s5 + $0x108] sm:$0xff] }
  0x53   :  { %1031 = vmatprep.subr.bf16.mxu1 %v1247_v1  ;;  %v1091_v47 = vpack.c.bf16 %v332_v46, %v329_v45  ;;  %v525_v45 = vld [vmem:[%s1797_s5 + $0x118] sm:$0xff]  ;;  %v527_v46 = vld [vmem:[%s1797_s5 + $0x128] sm:$0xff] }
  0x55   :  { %1052 = vmatpush1.bf16.msra.mxu0 %v1051_v48  ;;  %v491_v48 = vld [vmem:[%s1797_s5 + $0x8] sm:$0xff] }
  0x56   :  { %1033 = vmatpush1.bf16.msra.mxu1 %v1032_v21  ;;  %1054 = vmatprep.subr.bf16.mxu0 %v1053_v52  ;;  %v293_v21 = vld [vmem:[%s1796_s4 + $0x40] sm:$0xff]  ;;  %v1093_v50 = vpack.c.bf16 %v494_v49, %v491_v48  ;;  %v1115_v48 = vpack.c.bf16 %v523_v43, %v520_v40 }
  0x57   :  { %1034 = vmatprep.subr.bf16.mxu1 %v1247_v1  ;;  %v1073_v23 = vpack.c.bf16 %v296_v22, %v293_v21  ;;  %v490_v52 = vld [vmem:[%s1797_s5] sm:$0xff]  ;;  %v508_v22 = vld [vmem:[%s1797_s5 + $0x90] sm:$0xff] }
  0x58   :  { %v1095_v61 = vpack.c.bf16 %v493_v53, %v490_v52  ;;  %v526_v49 = vld [vmem:[%s1797_s5 + $0x120] sm:$0xff]  ;;  %v529_v52 = vld [vmem:[%s1797_s5 + $0x138] sm:$0xff]  ;;  %v528_v53 = vld [vmem:[%s1797_s5 + $0x130] sm:$0xff] }
  0x59   :  { %1056 = vmatpush1.bf16.msra.mxu0 %v1055_v54  ;;  %v492_v54 = vld [vmem:[%s1797_s5 + $0x10] sm:$0xff] }
  0x5a   :  { %1036 = vmatpush1.bf16.msra.mxu1 %v1035_v24  ;;  %1058 = vmatprep.subr.bf16.mxu0 %v1057_v58  ;;  %v299_v24 = vld [vmem:[%s1796_s4 + $0x70] sm:$0xff]  ;;  %v1126_v63 = vpack.c.bf16 %v495_v55, %v492_v54  ;;  %v531_v54 = vld [vmem:[%s1797_s5 + $0x148] sm:$0xff]  ;;  %v533_v55 = vld [vmem:[%s1797_s5 + $0x158] sm:$0xff] }
  0x5b   :  { %1069 = vmatprep.subr.bf16.mxu1 %v1247_v1  ;;  %v1076_v26 = vpack.c.bf16 %v302_v25, %v299_v24  ;;  %v500_v58 = vld [vmem:[%s1797_s5 + $0x50] sm:$0xff]  ;;  %v511_v25 = vld [vmem:[%s1797_s5 + $0xa8] sm:$0xff] }
  0x5c   :  { %v1097_v3 = vpack.c.bf16 %v500_v58, %v497_v57  ;;  %v1107_v30 = vpack.c.bf16 %v511_v25, %v508_v22  ;;  %v1119_v57 = vpack.c.bf16 %v529_v52, %v526_v49  ;;  %v532_v58 = vld [vmem:[%s1797_s5 + $0x150] sm:$0xff]  ;;  %v719_v25 = vld [vmem:[#allocation4 + $0x60] sm:$0xff] }
  0x5d   :  { %1060 = vmatpush1.bf16.msra.mxu0 %v1059_v60  ;;  %v717_v22 = vld [vmem:[#allocation4 + $0x50] sm:$0xff] }
  0x5e   :  { %1062 = vmatprep.subr.bf16.mxu0 %v1061_v2 }
  0x61   :  { %1064 = vmatpush1.bf16.msra.mxu0 %v1063_v4  ;;  %v499_v4 = vld [vmem:[%s1797_s5 + $0x48] sm:$0xff] }
  0x62   :  { %1066 = vmatprep.subr.bf16.mxu0 %v1065_v41 }
  0x65   :  { %1068 = vmatpush1.bf16.msra.mxu0 %v1067_v44  ;;  %v522_v44 = vld [vmem:[%s1797_s5 + $0x100] sm:$0xff] }
  0x66   :  { %1094 = vmatprep.subr.bf16.mxu0 %v1093_v50  ;;  %v1141_v50 = vpack.c.bf16 %v525_v45, %v522_v44  ;;  %v344_v45 = vsub.s32 2, %v1516_v6 }
 0x11b   :  { %v173_v12 = vpop.f32.mrb[0].mxu0 }
 0x11c   :  { %v174_v13 = vadd.f32 %v173_v12, %v100_v10  ;;  %v175_v14 = vpop.f32.mrb[1].mxu0  ;;  %v503_v10 = vld [vmem:[%s1797_s5 + $0x68] sm:$0xff]  ;;  %v1099_v12 = vpack.c.bf16 %v499_v4, %v496_v62  ;;  %v534_v62 = vld [vmem:[%s1797_s5 + $0x160] sm:$0xff] }
 0x11d   :  { %v176_v17 = vadd.f32 %v175_v14, %v104_v11  ;;  %v506_v11 = vld [vmem:[%s1797_s5 + $0x80] sm:$0xff]  ;;  %v1129_v14 = vpack.c.bf16 %v501_v8, %v498_v5  ;;  %v708_v8 = vld [vmem:[#allocation4 + $0x8] sm:$0xff] }
 0x11e   :  { %v178_v20 = vmax.f32 %v174_v13, 0.0  ;;  %v502_v13 = vld [vmem:[%s1797_s5 + $0x60] sm:$0xff]  ;;  %v1101_v15 = vpack.c.bf16 %v506_v11, %v503_v10  ;;  %v709_v11 = vld [vmem:[#allocation4 + $0x10] sm:$0xff] }
 0x11f   :  { %v179_v18 = vmax.f32 %v176_v17, 0.0  ;;  %v504_v17 = vld [vmem:[%s1797_s5 + $0x70] sm:$0xff]  ;;  %v1103_v21 = vpack.c.bf16 %v505_v16, %v502_v13  ;;  %v1757_v4 = vld [vmem:[%s1793_s1] sm:$0xff] }
 0x120   :  { %v707_v5 = vld [vmem:[#allocation4] sm:$0xff] }
 0x121   :  { %808 = vmatprep.mubr.msk.f32.mxu1 %vm210_vm0, %v179_v18  ;;  %v507_v18 = vld [vmem:[%s1797_s5 + $0x88] sm:$0xff]  ;;  %v1150_v10 = vpack.c.bf16 %v708_v8, %v707_v5 }
 0x122   :  { %279 = vmatmul.mubr.f32.vlgmr.msra.gmra.mrb[0].mxu1 %v178_v20  ;;  %v512_v20 = vld [vmem:[%s1797_s5 + $0xb0] sm:$0xff] }
 0x123   :  { %1071 = vmatpush3.bf16.msra.mxu1 %v1070_v19  ;;  %896 = vmatprep.mubr.msk.f32.mxu1 %vm1248_vm1, %v1246_v0  ;;  %v509_v19 = vld [vmem:[%s1797_s5 + $0x98] sm:$0xff] }
 0x124   :  { %1072 = vmatprep.subr.bf16.mxu1 %v1247_v1  ;;  %v1105_v24 = vpack.c.bf16 %v512_v20, %v509_v19  ;;  %v715_v19 = vld [vmem:[#allocation4 + $0x40] sm:$0xff]  ;;  %v716_v20 = vld [vmem:[#allocation4 + $0x48] sm:$0xff] }
 0x127   :  { %1074 = vmatpush3.bf16.msra.mxu1 %v1073_v23  ;;  %v1132_v23 = vpack.c.bf16 %v507_v18, %v504_v17  ;;  %v713_v17 = vld [vmem:[#allocation4 + $0x30] sm:$0xff] }
 0x128   :  { %1075 = vmatprep.subr.bf16.mxu1 %v1247_v1 }
 0x12b   :  { %1077 = vmatpush3.bf16.msra.mxu1 %v1076_v26  ;;  %v510_v26 = vld [vmem:[%s1797_s5 + $0xa0] sm:$0xff] }
 0x12c   :  { %1078 = vmatprep.subr.bf16.mxu1 %v1247_v1 }
 0x12f   :  { %1080 = vmatpush3.bf16.msra.mxu1 %v1079_v29  ;;  %v518_v29 = vld [vmem:[%s1797_s5 + $0xe0] sm:$0xff] }
 0x130   :  { %1081 = vmatprep.subr.bf16.mxu1 %v1247_v1  ;;  %v1109_v33 = vpack.c.bf16 %v518_v29, %v515_v28  ;;  %v721_v28 = vld [vmem:[#allocation4 + $0x70] sm:$0xff]  ;;  %v722_v29 = vld [vmem:[#allocation4 + $0x78] sm:$0xff] }
 0x133   :  { %1083 = vmatpush3.bf16.msra.mxu1 %v1082_v32  ;;  %v1135_v32 = vpack.c.bf16 %v513_v27, %v510_v26  ;;  %v720_v26 = vld [vmem:[#allocation4 + $0x68] sm:$0xff] }
 0x134   :  { %1084 = vmatprep.subr.bf16.mxu1 %v1247_v1  ;;  %v1168_v27 = vpack.c.bf16 %v720_v26, %v719_v25 }
 0x137   :  { %1086 = vmatpush3.bf16.msra.mxu1 %v1085_v35  ;;  %v516_v35 = vld [vmem:[%s1797_s5 + $0xd0] sm:$0xff] }
 0x138   :  { %1087 = vmatprep.subr.bf16.mxu1 %v1247_v1  ;;  %v1138_v41 = vpack.c.bf16 %v519_v36, %v516_v35 }
 0x13b   :  { %1089 = vmatpush3.bf16.msra.mxu1 %v1088_v38  ;;  %v524_v38 = vld [vmem:[%s1797_s5 + $0x110] sm:$0xff] }
 0x13c   :  { %1090 = vmatprep.subr.bf16.mxu1 %v1247_v1  ;;  %v1113_v42 = vpack.c.bf16 %v524_v38, %v521_v37 }
 0x13f   :  { %1092 = vmatpush3.bf16.msra.mxu1 %v1091_v47  ;;  %v530_v47 = vld [vmem:[%s1797_s5 + $0x140] sm:$0xff] }
 0x140   :  { %1125 = vmatprep.subr.bf16.mxu1 %v1247_v1 }
 0x1f5   :  { %v280_v56 = vpop.f32.mrb[0].mxu1 }
 0x1f6   :  { %v281_v59 = vadd.f32 %v807_v51, %v280_v56  ;;  %v282_v60 = vpop.f32.mrb[1].mxu1  ;;  %v1117_v51 = vpack.c.bf16 %v530_v47, %v527_v46  ;;  %v536_v56 = vld [vmem:[%s1797_s5 + $0x170] sm:$0xff] }
 0x1f7   :  { %v1121_v60 = vpack.c.bf16 %v536_v56, %v533_v55 }
 0x1f8   :  { %v284_v2 = vmax.f32 %v281_v59, 0.0  ;;  %v1144_v59 = vpack.c.bf16 %v531_v54, %v528_v53 }
 0x1fa   :  { %414 = vmatmul.mubr.f32.vlgmr.msra.gmra.mrb[2].mxu0 %v284_v2  ;;  %897 = vmatmul.mubr.f32.vlgmr.msra.gmra.mrb[2].mxu1 %v284_v2 }
 0x1fb   :  { %1096 = vmatpush1.bf16.msra.mxu0 %v1095_v61  ;;  %1127 = vmatpush3.bf16.msra.mxu1 %v1126_v63  ;;  %v535_v61 = vld [vmem:[%s1797_s5 + $0x168] sm:$0xff]  ;;  %v537_v63 = vld [vmem:[%s1797_s5 + $0x178] sm:$0xff] }
 0x1fc   :  { %1098 = vmatprep.subr.bf16.mxu0 %v1097_v3  ;;  %1128 = vmatprep.subr.bf16.mxu1 %v1247_v1  ;;  %v1123_v2 = vpack.c.bf16 %v535_v61, %v532_v58  ;;  %v1147_v3 = vpack.c.bf16 %v537_v63, %v534_v62  ;;  %v812_v58 = vld [vmem:[%s1799_s7 + $0x7] ss:$0 sm:$0xff] }
 0x1fd   :  { %602 = vmatprep.mubr.f32.mxu0 %v1246_v0  ;;  %931 = vmatprep.mubr.msk.f32.mxu1 %vm1248_vm1, %v1246_v0 }
 0x1ff   :  { %1100 = vmatpush1.bf16.msra.mxu0 %v1099_v12  ;;  %1130 = vmatpush3.bf16.msra.mxu1 %v1129_v14  ;;  %v710_v12 = vld [vmem:[#allocation4 + $0x18] sm:$0xff]  ;;  %v711_v14 = vld [vmem:[#allocation4 + $0x20] sm:$0xff] }
 0x200   :  { %1102 = vmatprep.subr.bf16.mxu0 %v1101_v15  ;;  %1131 = vmatprep.subr.bf16.mxu1 %v1247_v1  ;;  %v1153_v13 = vpack.c.bf16 %v710_v12, %v709_v11  ;;  %v712_v15 = vld [vmem:[#allocation4 + $0x28] sm:$0xff] }
 0x201   :  { %v1156_v16 = vpack.c.bf16 %v712_v15, %v711_v14 }
 0x203   :  { %1104 = vmatpush1.bf16.msra.mxu0 %v1103_v21  ;;  %1133 = vmatpush3.bf16.msra.mxu1 %v1132_v23  ;;  %v1162_v21 = vpack.c.bf16 %v716_v20, %v715_v19  ;;  %v718_v23 = vld [vmem:[#allocation4 + $0x58] sm:$0xff] }
 0x204   :  { %1106 = vmatprep.subr.bf16.mxu0 %v1105_v24  ;;  %1134 = vmatprep.subr.bf16.mxu1 %v1247_v1  ;;  %v1165_v24 = vpack.c.bf16 %v718_v23, %v717_v22 }
 0x207   :  { %1108 = vmatpush1.bf16.msra.mxu0 %v1107_v30  ;;  %1136 = vmatpush3.bf16.msra.mxu1 %v1135_v32  ;;  %v1171_v30 = vpack.c.bf16 %v722_v29, %v721_v28 }
 0x208   :  { %1110 = vmatprep.subr.bf16.mxu0 %v1109_v33  ;;  %1137 = vmatprep.subr.bf16.mxu1 %v1247_v1  ;;  %v61_v33 = vld [vmem:[%s1799_s7 + $0x3] sm:$0x7] }
 0x209   :  { %v337_v34 = vrot.slane %v61_v33, %v99_v7  ;;  %v341_v36 = vrot.slane %v61_v33, %v103_v9  ;;  %v811_v7 = vld [vmem:[%s1799_s7 + $0x6] ss:$0 sm:$0xff]  ;;  %v345_v9 = vrot.slane %v61_v33, %v344_v45 }
 0x20b   :  { %1112 = vmatpush1.bf16.msra.mxu0 %v1111_v39  ;;  %1139 = vmatpush3.bf16.msra.mxu1 %v1138_v41 }
 0x20c   :  { %1114 = vmatprep.subr.bf16.mxu0 %v1113_v42  ;;  %1140 = vmatprep.subr.bf16.mxu1 %v1247_v1 }
 0x20f   :  { %1116 = vmatpush1.bf16.msra.mxu0 %v1115_v48  ;;  %1142 = vmatpush3.bf16.msra.mxu1 %v1141_v50 }
 0x210   :  { %1118 = vmatprep.subr.bf16.mxu0 %v1117_v51  ;;  %1143 = vmatprep.subr.bf16.mxu1 %v1247_v1 }
 0x213   :  { %1120 = vmatpush1.bf16.msra.mxu0 %v1119_v57  ;;  %1145 = vmatpush3.bf16.msra.mxu1 %v1144_v59 }
 0x214   :  { %1122 = vmatprep.subr.bf16.mxu0 %v1121_v60  ;;  %1146 = vmatprep.subr.bf16.mxu1 %v1247_v1 }
 0x217   :  { %1124 = vmatpush1.bf16.msra.mxu0 %v1123_v2  ;;  %1148 = vmatpush3.bf16.msra.mxu1 %v1147_v3 }
 0x218   :  { %1149 = vmatprep.subr.bf16.mxu0 %v1247_v1 }
 0x21a   :  { %603 = vmatmul.mubr.f32.vlgmr.msra.gmra.mrb[2].mxu0 %v1757_v4  ;;  %932 = vmatmul.mubr.f32.vlgmr.msra.gmra.mrb[4].mxu1 %v1757_v4 }
 0x21b   :  { %966 = vmatprep.mubr.msk.f32.mxu0 %vm1248_vm1, %v1246_v0  ;;  %1151 = vmatpush3.bf16.msra.mxu0 %v1150_v10  ;;  %v714_v0 = vld [vmem:[#allocation4 + $0x38] sm:$0xff] }
 0x21c   :  { %1152 = vmatprep.subr.bf16.mxu0 %v1247_v1  ;;  %v1159_v18 = vpack.c.bf16 %v714_v0, %v713_v17 }
 0x21f   :  { %1154 = vmatpush3.bf16.msra.mxu0 %v1153_v13 }
 0x220   :  { %1155 = vmatprep.subr.bf16.mxu0 %v1247_v1 }
 0x223   :  { %1157 = vmatpush3.bf16.msra.mxu0 %v1156_v16 }
 0x224   :  { %1158 = vmatprep.subr.bf16.mxu0 %v1247_v1 }
 0x227   :  { %1160 = vmatpush3.bf16.msra.mxu0 %v1159_v18 }
 0x228   :  { %1161 = vmatprep.subr.bf16.mxu0 %v1247_v1 }
 0x22b   :  { %1163 = vmatpush3.bf16.msra.mxu0 %v1162_v21 }
 0x22c   :  { %1164 = vmatprep.subr.bf16.mxu0 %v1247_v1 }
 0x22f   :  { %1166 = vmatpush3.bf16.msra.mxu0 %v1165_v24 }
 0x230   :  { %1167 = vmatprep.subr.bf16.mxu0 %v1247_v1 }
 0x233   :  { %1169 = vmatpush3.bf16.msra.mxu0 %v1168_v27 }
 0x234   :  { %1170 = vmatprep.subr.bf16.mxu0 %v1247_v1 }
 0x237   :  { %1172 = vmatpush3.bf16.msra.mxu0 %v1171_v30 }
 0x2cd   :  { %v486_v31 = vpop.f32.mrb[2].mxu1 }
 0x2ce   :  { %v898_v32 = vpop.f32.mrb[3].mxu1  ;;  %v487_v50 = vadd.f32 %v486_v31, %v345_v9 }
 0x2ed   :  { %v604_v35 = vpop.f32.mrb[2].mxu0  ;;  %v675_v37 = vpop.f32.mrb[4].mxu1 }
 0x2ee   :  { %v1173_v38 = vadd.f32 %v604_v35, %v337_v34  ;;  %v606_v39 = vpop.f32.mrb[3].mxu0  ;;  %v933_v40 = vpop.f32.mrb[5].mxu1  ;;  %v699_v48 = vadd.f32 %v811_v7, %v675_v37 }
 0x2ef   :  { %v1174_v1 = vadd.f32 %v606_v39, %v341_v36 }
 0x2f0   :  { %v809_v41 = vmul.f32 -1.442695, %v1173_v38 }
 0x2f1   :  { %v810_v42 = vmul.f32 -1.442695, %v1174_v1 }
 0x2f2   :  { %1184 = vpow2.f32 %v809_v41 }
 0x2f3   :  { %1186 = vpow2.f32 %v810_v42 }
 0x2fc   :  { %v1185_v43 = vpop.eup %1184 }
 0x2fd   :  { %v683_v44 = vadd.f32 1.0, %v1185_v43  ;;  %v1187_v46 = vpop.eup %1186 }
 0x2fe   :  { %v690_v47 = vadd.f32 1.0, %v1187_v46 }
 0x2ff   :  { %1188 = vrcp.f32 %v683_v44 }
 0x300   :  { %1190 = vrcp.f32 %v690_v47 }
 0x309   :  { %v1189_v49 = vpop.eup %1188 }
 0x30a   :  { %v700_v51 = vmul.f32 %v1189_v49, %v699_v48  ;;  %v1191_v53 = vpop.eup %1190 }
 0x30b   :  { %v703_v54 = vsub.f32 1.0, %v1191_v53  ;;  %v705_v6 = vmul.f32 %v1191_v53, %v1757_v4 }
 0x30c   :  { %v701_v52 = vadd.f32 %v700_v51, %v487_v50 }
 0x30e   :  { %1192 = vtanh.f32 %v701_v52 }
 0x318   :  { %v1193_v55 = vpop.eup %1192 }
 0x319   :  { %v704_v56 = vmul.f32 %v1193_v55, %v703_v54 }
 0x31b   :  { %v706_v57 = vadd.f32 %v705_v6, %v704_v56 }
 0x31d   :  { %967 = vmatmul.mubr.f32.vlgmr.msra.gmra.mrb[4].mxu0 %v706_v57  ;;  %799 = vst [vmem:[%s1800_s8] sm:$0xff] %v706_v57 }
 0x3f0   :  { %v795_v59 = vpop.f32.mrb[4].mxu0 }
 0x3f1   :  { %v796_v60 = vadd.f32 %v812_v58, %v795_v59  ;;  %v968_v61 = vpop.f32.mrb[5].mxu0 }
 0x3f3   :  { %800 = vst [vmem:[%s1800_s8 + $0x8] sm:$0xff] %v796_v60 }
 0x3f4   :  { %805 = vsyncpa [#allocation3], 1 }
 0x3f5   :  { %806 = vsyncpa [#allocation5], 1 }

</bundles_post_ra>
